<compile_context>
chip_gen: v7x
topology: tpu7x:2x2x1
jax: 0.10.0
libtpu: 0.0.40
codegen_flags: <defaults>
</compile_context>

<pallas_src>
import jax
import jax.numpy as jnp
from jax.experimental import pallas as pl
from jax.experimental.pallas import tpu as pltpu

NEG_SLOPE = 0.01  # nn.LeakyReLU() default negative_slope


def _round_up(x, m):
    return ((x + m - 1) // m) * m


def _mlp_kernel(x_ref, w1_ref, b1_ref, w2_ref, b2_ref, o_ref):
    # Fused in-VMEM: matmul -> bias -> LeakyReLU -> matmul -> bias.
    x = x_ref[...]                                       # (TB, D_in)
    h = jnp.dot(x, w1_ref[...],
                preferred_element_type=jnp.float32)      # (TB, H_p) f32
    h = h + b1_ref[...]                                  # broadcast (1, H_p)
    h = jnp.where(h >= 0, h, NEG_SLOPE * h)              # LeakyReLU(0.01)
    y = jnp.dot(h, w2_ref[...].astype(jnp.float32),
                preferred_element_type=jnp.float32)      # (TB, D_out) f32
    y = y + b2_ref[...]                                  # broadcast (1, D_out)
    o_ref[...] = y.astype(o_ref.dtype)


def prepare_mlp_params(w1, b1, w2, b2):
    """Pad the hidden dim to a multiple of 128 ONCE, at parameter-prep time.

    w1: (D_in, H), b1: (H,), w2: (H, D_out), b2: (D_out,)  (pre-transposed,
    i.e. identical math to PyTorch's x @ W.T + b).
    """
    D_in, H = w1.shape
    D_out = w2.shape[1]
    H_p = _round_up(H, 128)
    w1_p = jnp.zeros((D_in, H_p), w1.dtype).at[:, :H].set(w1)
    b1_p = jnp.zeros((1, H_p), b1.dtype).at[0, :H].set(b1)
    w2_p = jnp.zeros((H_p, D_out), w2.dtype).at[:H, :].set(w2)
    b2_p = b2.reshape(1, D_out)
    return w1_p, b1_p, w2_p, b2_p


def _pick_tb(B, block_b):
    # Multiple of 8 sublanes; aim for >= ~8 grid steps on large B (keeps both
    # v7x TensorCores fed), never exceed block_b.
    tb = _round_up(max(1, -(-B // 8)), 8)
    return max(8, min(block_b, tb))


def mlp_forward(x, w1_p, b1_p, w2_p, b2_p, *, block_b=2048):
    """x: (B, D_in); padded params from prepare_mlp_params()."""
    B, D_in = x.shape
    D_in_w, H_p = w1_p.shape
    D_out = w2_p.shape[1]
    assert D_in == D_in_w

    out_dtype = x.dtype
    itemsize = jnp.dtype(out_dtype).itemsize

    TB = _pick_tb(B, block_b)
    grid = (pl.cdiv(B, TB),)   # non-divisible grid: last block is clipped

    # ---- advisory cost estimate (real, unpadded x/out bytes) ---------------
    cost = pl.CostEstimate(
        flops=2 * B * (D_in * H_p + H_p * D_out),
        transcendentals=0,
        bytes_accessed=(x.size + B * D_out) * itemsize
        + (w1_p.size + b1_p.size + w2_p.size + b2_p.size)
        * jnp.dtype(w1_p.dtype).itemsize,
    )

    # ---- VMEM budget: double-buffered x/out tiles + resident weights -------
    vmem_bytes = (
        2 * TB * D_in * itemsize            # double-buffered x tile
        + 2 * TB * D_out * itemsize         # double-buffered out tile
        + 2 * (D_in * H_p + H_p + H_p * D_out + D_out) * itemsize  # weights
        + TB * H_p * 4                      # f32 intermediate activation
    )
    try:
        vmem_cap = pltpu.get_tpu_info().vmem_capacity_bytes
    except Exception:
        vmem_cap = 64 << 20                 # v7x per-TC VMEM as safe floor
    vmem_limit = int(min(max(4 * vmem_bytes, 16 << 20), int(0.75 * vmem_cap)))

    out = pl.pallas_call(
        _mlp_kernel,
        out_shape=jax.ShapeDtypeStruct((B, D_out), out_dtype),
        grid=grid,
        in_specs=[
            pl.BlockSpec((TB, D_in), lambda i: (i, 0)),       # x: tiled on B
            pl.BlockSpec((D_in, H_p), lambda i: (0, 0)),      # w1: resident
            pl.BlockSpec((1, H_p), lambda i: (0, 0)),         # b1: resident
            pl.BlockSpec((H_p, D_out), lambda i: (0, 0)),     # w2: resident
            pl.BlockSpec((1, D_out), lambda i: (0, 0)),       # b2: resident
        ],
        out_specs=pl.BlockSpec((TB, D_out), lambda i: (i, 0)),
        compiler_params=pltpu.CompilerParams(
            dimension_semantics=("parallel",),
            vmem_limit_bytes=vmem_limit,
        ),
        cost_estimate=cost,
    )(x, w1_p, b1_p, w2_p, b2_p)

    return out


def _ref_mlp(x, w1, b1, w2, b2):
    h = x @ w1 + b1
    h = jnp.where(h >= 0, h, NEG_SLOPE * h)
    return h @ w2 + b2


if __name__ == "__main__":
    # Small shapes consistent with the module's MLP expert
    # (embedding_dimension -> hidden -> output_size).
    B, D_in, H, D_out = 8, 32, 64, 16

    key = jax.random.PRNGKey(0)
    kx, k1, k2, k3, k4 = jax.random.split(key, 5)

    x = jax.random.normal(kx, (B, D_in), dtype=jnp.float32)
    # Linear weights stored pre-transposed as (in, out): identical math to
    # PyTorch's x @ W.T + b.
    w1 = jax.random.normal(k1, (D_in, H), dtype=jnp.float32) * 0.1
    b1 = jax.random.normal(k2, (H,), dtype=jnp.float32) * 0.1
    w2 = jax.random.normal(k3, (H, D_out), dtype=jnp.float32) * 0.1
    b2 = jax.random.normal(k4, (D_out,), dtype=jnp.float32) * 0.1

    # Pad weights ONCE at parameter-prep time (hoisted out of the fwd call).
    w1_p, b1_p, w2_p, b2_p = prepare_mlp_params(w1, b1, w2, b2)

    out = jax.block_until_ready(mlp_forward(x, w1_p, b1_p, w2_p, b2_p))
    ref = _ref_mlp(x, w1, b1, w2, b2)
    assert out.shape == (B, D_out)
    assert jnp.allclose(out, ref, atol=1e-5, rtol=1e-5), "mismatch vs reference"

    # Batch large enough to tile (grid > 1, non-divisible last block) to
    # validate the pipelined + clipped-boundary path.
    B2 = 1000
    x_big = jax.random.normal(kx, (B2, D_in), dtype=jnp.float32)
    out_big = jax.block_until_ready(mlp_forward(x_big, w1_p, b1_p, w2_p, b2_p))
    ref_big = _ref_mlp(x_big, w1, b1, w2, b2)
    assert out_big.shape == (B2, D_out)
    assert jnp.allclose(out_big, ref_big, atol=1e-5, rtol=1e-5), "big-batch mismatch"

    print("KERNEL_OK")
</pallas_src>

<mosaic_0001>
module attributes {stable_mosaic.version = 11 : i64} {
  func.func @_mlp_kernel(%arg0: i32, %arg1: memref<8x32xf32, #tpu.memory_space<vmem>>, %arg2: memref<32x128xf32, #tpu.memory_space<vmem>>, %arg3: memref<1x128xf32, #tpu.memory_space<vmem>>, %arg4: memref<128x16xf32, #tpu.memory_space<vmem>>, %arg5: memref<1x16xf32, #tpu.memory_space<vmem>>, %arg6: memref<8x16xf32, #tpu.memory_space<vmem>>) attributes {dimension_semantics = [#tpu.dimension_semantics<parallel>], iteration_bounds = array<i64: 1>, scalar_prefetch = 0 : i64, scratch_operands = 0 : i64, tpu.core_type = #tpu.core_type<tc>, window_params = [{transform_indices = @transform_0, window_bounds = array<i64: 8, 32>}, {pipeline_mode = #tpu.pipeline_mode<synchronous>, transform_indices = @transform_1, window_bounds = array<i64: 32, 128>}, {pipeline_mode = #tpu.pipeline_mode<synchronous>, transform_indices = @transform_2, window_bounds = array<i64: 1, 128>}, {pipeline_mode = #tpu.pipeline_mode<synchronous>, transform_indices = @transform_3, window_bounds = array<i64: 128, 16>}, {pipeline_mode = #tpu.pipeline_mode<synchronous>, transform_indices = @transform_4, window_bounds = array<i64: 1, 16>}, {transform_indices = @transform_5, window_bounds = array<i64: 8, 16>}]} {
    %c0 = arith.constant 0 : index
    %c0_0 = arith.constant 0 : index
    %0 = vector.load %arg1[%c0, %c0_0] : memref<8x32xf32, #tpu.memory_space<vmem>>, vector<8x32xf32>
    %c0_1 = arith.constant 0 : index
    %c0_2 = arith.constant 0 : index
    %1 = vector.load %arg2[%c0_1, %c0_2] : memref<32x128xf32, #tpu.memory_space<vmem>>, vector<32x128xf32>
    %cst = arith.constant dense<0.000000e+00> : vector<8x128xf32>
    %2 = tpu.matmul %0, %1, %cst {dimension_numbers = #tpu.dot_dimension_numbers<[1], [0], [0], [1], [0, 0, 1, 1], [], []>} : vector<8x32xf32>, vector<32x128xf32>, vector<8x128xf32> -> vector<8x128xf32>
    %c0_3 = arith.constant 0 : index
    %c0_4 = arith.constant 0 : index
    %3 = vector.load %arg3[%c0_3, %c0_4] : memref<1x128xf32, #tpu.memory_space<vmem>>, vector<1x128xf32>
    %4 = vector.broadcast %3 : vector<1x128xf32> to vector<8x128xf32>
    %5 = arith.addf %2, %4 : vector<8x128xf32>
    %cst_5 = arith.constant 0.000000e+00 : f32
    %6 = vector.broadcast %cst_5 : f32 to vector<8x128xf32>
    %7 = arith.cmpf oge, %5, %6 : vector<8x128xf32>
    %cst_6 = arith.constant 0.00999999977 : f32
    %8 = vector.broadcast %cst_6 : f32 to vector<8x128xf32>
    %9 = arith.mulf %8, %5 : vector<8x128xf32>
    %10 = arith.select %7, %5, %9 : vector<8x128xi1>, vector<8x128xf32>
    %c0_7 = arith.constant 0 : index
    %c0_8 = arith.constant 0 : index
    %11 = vector.load %arg4[%c0_7, %c0_8] : memref<128x16xf32, #tpu.memory_space<vmem>>, vector<128x16xf32>
    %cst_9 = arith.constant dense<0.000000e+00> : vector<8x16xf32>
    %12 = tpu.matmul %10, %11, %cst_9 {dimension_numbers = #tpu.dot_dimension_numbers<[1], [0], [0], [1], [0, 0, 1, 1], [], []>} : vector<8x128xf32>, vector<128x16xf32>, vector<8x16xf32> -> vector<8x16xf32>
    %c0_10 = arith.constant 0 : index
    %c0_11 = arith.constant 0 : index
    %13 = vector.load %arg5[%c0_10, %c0_11] : memref<1x16xf32, #tpu.memory_space<vmem>>, vector<1x16xf32>
    %14 = vector.broadcast %13 : vector<1x16xf32> to vector<8x16xf32>
    %15 = arith.addf %12, %14 : vector<8x16xf32>
    %c0_12 = arith.constant 0 : index
    %c0_13 = arith.constant 0 : index
    %16 = vector.load %arg6[%c0_12, %c0_13] : memref<8x16xf32, #tpu.memory_space<vmem>>, vector<8x16xf32>
    tpu.vector_store %arg6[%c0_12, %c0_13], %15 {strides = array<i32>} : memref<8x16xf32, #tpu.memory_space<vmem>>, vector<8x16xf32>,
    return
  }
  func.func @transform_0(%arg0: i32) -> (i32, i32) {
    %c0_i32 = arith.constant 0 : i32
    %c0_i32_0 = arith.constant 0 : i32
    return %arg0, %c0_i32 : i32, i32
  }
  func.func @transform_1(%arg0: i32) -> (i32, i32) {
    %c0_i32 = arith.constant 0 : i32
    %c0_i32_0 = arith.constant 0 : i32
    %c0_i32_1 = arith.constant 0 : i32
    return %c0_i32, %c0_i32_0 : i32, i32
  }
  func.func @transform_2(%arg0: i32) -> (i32, i32) {
    %c0_i32 = arith.constant 0 : i32
    %c0_i32_0 = arith.constant 0 : i32
    %c0_i32_1 = arith.constant 0 : i32
    return %c0_i32, %c0_i32_0 : i32, i32
  }
  func.func @transform_3(%arg0: i32) -> (i32, i32) {
    %c0_i32 = arith.constant 0 : i32
    %c0_i32_0 = arith.constant 0 : i32
    %c0_i32_1 = arith.constant 0 : i32
    return %c0_i32, %c0_i32_0 : i32, i32
  }
  func.func @transform_4(%arg0: i32) -> (i32, i32) {
    %c0_i32 = arith.constant 0 : i32
    %c0_i32_0 = arith.constant 0 : i32
    %c0_i32_1 = arith.constant 0 : i32
    return %c0_i32, %c0_i32_0 : i32, i32
  }
  func.func @transform_5(%arg0: i32) -> (i32, i32) {
    %c0_i32 = arith.constant 0 : i32
    %c0_i32_0 = arith.constant 0 : i32
    return %arg0, %c0_i32 : i32, i32
  }
}

</mosaic_0001>

<bundles_post_ra>
// kernel: tpu_custom_call.1
= control target key start
LH: loop header
LB: loop body
LE: loop exit
PB: predicated region body
PF: predicated region fallthrough
CT: control target
= control target key end

     0   :  { %v348_v3 = vmov 0.0|0.0   ;;  %vm349_vm0 = vmmov 0   ;;  %v350_v6 = vmov 0.0   ;;  %s463_s0 = inlined_call_operand.vmem [shape: f32[8,32], index: 0, kind: input, shape index: {}]   ;;  %s464_s1 = inlined_call_operand.vmem [shape: f32[32,128], index: 1, kind: input, shape index: {}]   ;;  %s465_s2 = inlined_call_operand.vmem [shape: f32[1,128], index: 2, kind: input, shape index: {}]   ;;  %s466_s3 = inlined_call_operand.vmem [shape: f32[128,16], index: 3, kind: input, shape index: {}]   ;;  %s467_s4 = inlined_call_operand.vmem [shape: f32[1,16], index: 4, kind: input, shape index: {}]   ;;  %s468_s5 = inlined_call_operand.hbm [shape: f32[8,16], index: 5, kind: output, shape index: {}]  }
   0x1   :  { %v22_v0 = vld [vmem:[%s464_s1] sm:$0xff]  ;;  %v23_v1 = vld [vmem:[%s464_s1 + $0x8] sm:$0xff]  ;;  %v24_v2 = vld [vmem:[%s464_s1 + $0x10] sm:$0xff]  ;;  %290 = vmatprep.subr.bf16.mxu0 %v348_v3  ;;  %252 = vmatprep.mubr.msk.f32.mxu0 %vm349_vm0, %v350_v6 }
   0x2   :  { %v291_v4 = vpack.c.bf16 %v23_v1, %v22_v0  ;;  %v25_v5 = vld [vmem:[%s464_s1 + $0x18] sm:$0xff]  ;;  %v110_v7 = vld [vmem:[%s466_s3] sm:$0xff]  ;;  %296 = vmatprep.subr.bf16.mxu1 %v348_v3  ;;  %v111_v8 = vld [vmem:[%s466_s3 + $0x8] sm:$0xff]  ;;  %287 = vmatprep.mubr.msk.f32.mxu1 %vm349_vm0, %v350_v6 }
   0x3   :  { %v112_v9 = vld [vmem:[%s466_s3 + $0x10] sm:$0xff]  ;;  %v113_v10 = vld [vmem:[%s466_s3 + $0x18] sm:$0xff]  ;;  %v294_v11 = vpack.c.bf16 %v25_v5, %v24_v2  ;;  %v297_v12 = vpack.c.bf16 %v111_v8, %v110_v7  ;;  %v114_v14 = vld [vmem:[%s466_s3 + $0x20] sm:$0xff] }
   0x4   :  { %292 = vmatpush3.bf16.msra.mxu0 %v291_v4  ;;  %v300_v13 = vpack.c.bf16 %v113_v10, %v112_v9  ;;  %v115_v15 = vld [vmem:[%s466_s3 + $0x28] sm:$0xff] }
   0x5   :  { %293 = vmatprep.subr.bf16.mxu0 %v348_v3  ;;  %298 = vmatpush3.bf16.msra.mxu1 %v297_v12 }
   0x6   :  { %299 = vmatprep.subr.bf16.mxu1 %v348_v3 }
   0x7   :  { %10 = vsyncpa [#allocation3], 0  ;;  %v21_v16 = vld [vmem:[%s463_s0] sm:$0xff]  ;;  %vm33_vm1 = vcmask 261120   ;;  %v303_v17 = vpack.c.bf16 %v115_v15, %v114_v14  ;;  %v116_v18 = vld [vmem:[%s466_s3 + $0x30] sm:$0xff]  ;;  %s351_s11 = smov [#allocation2]  }
   0x8   :  { %295 = vmatpush3.bf16.msra.mxu0 %v294_v11  ;;  %v117_v19 = vld [vmem:[%s466_s3 + $0x38] sm:$0xff]  ;;  %v118_v21 = vld [vmem:[%s466_s3 + $0x40] sm:$0xff]  ;;  %v119_v22 = vld [vmem:[%s466_s3 + $0x48] sm:$0xff]  ;;  %s211_s12 = sshll.u32 %s351_s11, 4  ;;  %vm203_vm3 = vcmask 130048   ;;  %s212_s12 = int_to_ptr.vmem [resolvable:$true] %s211_s12 }
   0x9   :  { %301 = vmatpush3.bf16.msra.mxu1 %v300_v13  ;;  %v306_v20 = vpack.c.bf16 %v117_v19, %v116_v18  ;;  %v309_v23 = vpack.c.bf16 %v119_v22, %v118_v21  ;;  %v120_v24 = vld [vmem:[%s466_s3 + $0x50] sm:$0xff]  ;;  %v121_v25 = vld [vmem:[%s466_s3 + $0x58] sm:$0xff]  ;;  %v122_v27 = vld [vmem:[%s466_s3 + $0x60] sm:$0xff]  ;;  %p329_p1 = scmp.lt.s32.totalorder %s212_s12, %s212_s12 }
   0xa   :  { %302 = vmatprep.subr.bf16.mxu1 %v348_v3  ;;  %v312_v26 = vpack.c.bf16 %v121_v25, %v120_v24  ;;  %v123_v28 = vld [vmem:[%s466_s3 + $0x68] sm:$0xff]  ;;  %v124_v30 = vld [vmem:[%s466_s3 + $0x70] sm:$0xff]  ;;  %v125_v31 = vld [vmem:[%s466_s3 + $0x78] sm:$0xff] }
   0xb   :  { %253 = vmatmul.mubr.msk.f32.vlgmr.msra.gmra.mrb[0].mxu0 %vm33_vm1, %v21_v16  ;;  %v315_v29 = vpack.c.bf16 %v123_v28, %v122_v27  ;;  %v318_v32 = vpack.c.bf16 %v125_v31, %v124_v30  ;;  %v219_v33 = vld [vmem:[%s465_s2] ss:$0 sm:$0xff]  ;;  %s324_s2 = scalar_lea.vmem %s212_s12, 128 }
   0xc   :  { %v221_v39 = vld [vmem:[%s467_s4] ss:$0 sm:$0xff]  ;;  %p325_p0 = scmp.ne.s32.totalorder %s212_s12, %s324_s2  ;;  %p330_p2 = scmp.lt.s32.totalorder %s324_s2, %s324_s2 }
   0xd   :  { %304 = vmatpush3.bf16.msra.mxu1 %v303_v17 }
   0xe   :  { %305 = vmatprep.subr.bf16.mxu1 %v348_v3  ;;  %p331_p3 = por %p330_p2, %p329_p1 }
  0x10   :  { %p332_p4 = pnand %p331_p3, %p325_p0 }
  0x11   :  { %307 = vmatpush3.bf16.msra.mxu1 %v306_v20 }
  0x12   :  { %308 = vmatprep.subr.bf16.mxu1 %v348_v3 }
  0x15   :  { %310 = vmatpush3.bf16.msra.mxu1 %v309_v23 }
  0x16   :  { %311 = vmatprep.subr.bf16.mxu1 %v348_v3 }
  0x19   :  { %313 = vmatpush3.bf16.msra.mxu1 %v312_v26 }
  0x1a   :  { %314 = vmatprep.subr.bf16.mxu1 %v348_v3 }
  0x1d   :  { %316 = vmatpush3.bf16.msra.mxu1 %v315_v29 }
  0x1e   :  { %317 = vmatprep.subr.bf16.mxu1 %v348_v3 }
  0x21   :  { %319 = vmatpush3.bf16.msra.mxu1 %v318_v32 }
  0xde   :  { %v103_v34 = vpop.f32.mrb[0].mxu0 }
  0xdf   :  { %v104_v35 = vadd.f32 %v219_v33, %v103_v34  ;;  %v254_v36 = vpop.f32.mrb[1].mxu0 }
  0xe1   :  { %v108_v37 = vmul.f32 0.01, %v104_v35  ;;  %vm107_vm2 = vcmp.ge.f32.partialorder %v104_v35, 0.0 }
  0xe3   :  { %v109_v38 = vsel %vm107_vm2, %v104_v35, %v108_v37 }
  0xe4   :  { %288 = vmatmul.mubr.f32.vlgmr.msra.gmra.mrb[0].mxu1 %v109_v38 }
 0x1b7   :  { %v199_v40 = vpop.f32.mrb[0].mxu1 }
 0x1b8   :  { %v200_v41 = vadd.f32 %v221_v39, %v199_v40  ;;  %v289_v42 = vpop.f32.mrb[1].mxu1 }
 0x1ba   :  { %204 = vst.msk [vmem:[#allocation2] sm:$0xff] %vm203_vm3, %v200_v41 }
 0x1bb   :  { %335 = shalt.err (!%p332_p4)
}
 0x1bc   :  { %s336_s14 = scalar_lea.hbm %s468_s5, 128 }
 0x1bd   :  { %p337_p5 = scmp.ne.s32.totalorder %s468_s5, %s336_s14  ;;  %p340_p6 = scmp.lt.u32.totalorder %s336_s14, %s468_s5 }
 0x1bf   :  { %p342_p7 = pnand %p340_p6, %p337_p5 }
 0x1c1   :  { %345 = shalt.err (!%p342_p7)
}
 0x1c2   :  { %214 = dma.vmem_to_hbm [thread:$0]  %s212_s12, 128, %s468_s5, [#allocation3]  }
 0x1c3   :  { %346 = dma.done.wait [#allocation3], 128  }
 0x1c4   :  { %347 = vsyncadd [#allocation3], 4294967168 }
 0x1c5   :  { %218 = vsyncpa [#allocation3], 1 }

</bundles_post_ra>
